<compile_context>
chip_gen: v7x
topology: tpu7x:2x2x1
jax: 0.10.0
libtpu: 0.0.40
codegen_flags: <defaults>
</compile_context>

<pallas_src>
import functools

import jax
import jax.numpy as jnp
from jax.experimental import pallas as pl
from jax.experimental.pallas import tpu as pltpu


_LANES = 128
_TARGET_BLOCK_BYTES = 4 * 1024 * 1024  # ~4 MiB per output block (perf review)


def _cst_kernel(c_ref, o_ref):
    # c_ref: (1,) scalar in SMEM (cheap sld); o_ref: (block_rows, 128) lane-dense
    # VMEM block.  Broadcast the constant over the whole block: full-width,
    # unmasked vector stores only.
    o_ref[...] = jnp.full(o_ref.shape, c_ref[0], dtype=o_ref.dtype)


@functools.partial(jax.jit, static_argnames=("batch",))
def _cst_fill_xla(c, batch):
    # Fused XLA fill: effectively free for small outputs, differentiable.
    return jnp.broadcast_to(c.reshape(1, 1), (batch, 1))


@functools.partial(jax.jit, static_argnames=("batch",))
def _cst_fill_pallas(c, batch):
    dtype = c.dtype
    itemsize = jnp.dtype(dtype).itemsize
    # Sublane multiple for this dtype (8 for 32-bit, 16 for bf16, 32 for 8-bit).
    sub_mult = 8 * max(1, 4 // itemsize)

    rows = -(-batch // _LANES)  # ceil(batch / 128) rows of a (rows, 128) slab
    target_rows = max(sub_mult, _TARGET_BLOCK_BYTES // (_LANES * itemsize))

    if rows <= 2 * sub_mult:
        # Tiny output: one block covering the full array (full-dim block is legal
        # even when rows is not a multiple of the sublane count).
        block_rows = rows
    elif rows <= 2 * target_rows:
        # Fits in <=2 target blocks: split into ~2 blocks so v7x's two TensorCores
        # both drive HBM writeback (neutral on single-TC v5e/v6e).
        half = -(-rows // 2)
        block_rows = -(-half // sub_mult) * sub_mult
    else:
        block_rows = (target_rows // sub_mult) * sub_mult

    n_blocks = -(-rows // block_rows)
    rows_total = n_blocks * block_rows
    slab_bytes = rows_total * _LANES * itemsize

    slab = pl.pallas_call(
        _cst_kernel,
        grid=(n_blocks,),
        out_shape=jax.ShapeDtypeStruct((rows_total, _LANES), dtype),
        in_specs=[pl.BlockSpec(memory_space=pltpu.MemorySpace.SMEM)],
        out_specs=pl.BlockSpec((block_rows, _LANES), lambda i: (i, 0)),
        compiler_params=pltpu.CompilerParams(
            dimension_semantics=("parallel",)),
        cost_estimate=pl.CostEstimate(
            flops=0, transcendentals=0, bytes_accessed=slab_bytes),
    )(c)

    if rows_total * _LANES == batch:
        # Row-major (rows, 128) flatten == (batch, 1) layout: free bitcast reshape.
        return slab.reshape(batch, 1)
    # Padded case: contiguous-prefix slice (only the valid 4*batch bytes re-read).
    return slab.reshape(-1)[:batch].reshape(batch, 1)


class Cst:
    """JAX/Pallas port of the PyTorch `Cst` module (a constant scale_vec)."""

    # Below this batch size a fused XLA fill beats any custom-call dispatch.
    _PALLAS_MIN_BATCH = 1 << 20

    def __init__(self, init, dim=None, *, pallas_min_batch=None):
        init = jnp.asarray(init)
        if init.size != 1:
            # torch's expand(batch, 1) only succeeds for a single-element init.
            raise ValueError("Cst init must be a scalar / single-element tensor")
        # torch: init.unsqueeze(0) -> shape (1,); dtype of init is preserved.
        self.c = init.reshape(1)
        self.pallas_min_batch = (
            self._PALLAS_MIN_BATCH if pallas_min_batch is None else pallas_min_batch
        )

    def __call__(self, x):
        batch = int(x.shape[0])
        if batch < self.pallas_min_batch:
            return _cst_fill_xla(self.c, batch)
        return _cst_fill_pallas(self.c, batch)


if __name__ == "__main__":
    key = jax.random.PRNGKey(0)
    k_init, k_x = jax.random.split(key)

    # Deterministic scalar init (the module's constant) and a small NCHW input
    # whose values are irrelevant — only the batch size matters.
    init_val = jax.random.normal(k_init, ())            # scalar constant (f32)
    x = jax.random.normal(k_x, (2, 4, 16, 16), dtype=jnp.float32)

    expected = jnp.broadcast_to(
        jnp.asarray(init_val, jnp.float32).reshape(1, 1), (x.shape[0], 1))

    # 1) Force the Pallas path (threshold=1) so the kernel itself is exercised.
    mod_pallas = Cst(init_val, pallas_min_batch=1)
    y_pallas = jax.block_until_ready(mod_pallas(x))
    assert y_pallas.shape == (2, 1)
    assert y_pallas.dtype == expected.dtype
    assert jnp.allclose(y_pallas, expected)

    # 2) Default module uses the fused-XLA fast path for this tiny batch.
    mod = Cst(init_val)
    y_fast = jax.block_until_ready(mod(x))
    assert y_fast.shape == (2, 1)
    assert jnp.allclose(y_fast, expected)
    assert jnp.allclose(y_fast, y_pallas)

    print("KERNEL_OK")
</pallas_src>

<mosaic_0001>
module attributes {stable_mosaic.version = 11 : i64} {
  func.func @_cst_kernel(%arg0: i32, %arg1: memref<1xf32, #tpu.memory_space<smem>>, %arg2: memref<1x128xf32, #tpu.memory_space<vmem>>) attributes {dimension_semantics = [#tpu.dimension_semantics<parallel>], iteration_bounds = array<i64: 1>, scalar_prefetch = 0 : i64, scratch_operands = 0 : i64, tpu.core_type = #tpu.core_type<tc>, window_params = [{transform_indices = @transform_0, window_bounds = array<i64: 1>}, {transform_indices = @transform_1, window_bounds = array<i64: 1, 128>}]} {
    %c0 = arith.constant 0 : index
    %0 = memref.load %arg1[%c0] : memref<1xf32, #tpu.memory_space<smem>>
    %1 = vector.broadcast %0 : f32 to vector<1x128xf32>
    %c0_0 = arith.constant 0 : index
    %c0_1 = arith.constant 0 : index
    %2 = vector.load %arg2[%c0_0, %c0_1] : memref<1x128xf32, #tpu.memory_space<vmem>>, vector<1x128xf32>
    tpu.vector_store %arg2[%c0_0, %c0_1], %1 {strides = array<i32>} : memref<1x128xf32, #tpu.memory_space<vmem>>, vector<1x128xf32>,
    return
  }
  func.func @transform_0(%arg0: i32) -> i32 {
    %c0_i32 = arith.constant 0 : i32
    %c0_i32_0 = arith.constant 0 : i32
    return %c0_i32 : i32
  }
  func.func @transform_1(%arg0: i32) -> (i32, i32) {
    %c0_i32 = arith.constant 0 : i32
    %c0_i32_0 = arith.constant 0 : i32
    return %arg0, %c0_i32 : i32, i32
  }
}

</mosaic_0001>

<bundles_post_ra>
// kernel: _cst_fill_pallas.1
= control target key start
LH: loop header
LB: loop body
LE: loop exit
PB: predicated region body
PF: predicated region fallthrough
CT: control target
= control target key end

     0   :  { %s32_s0 = inlined_call_operand.<no memory space> [shape: f32[1], index: 0, kind: input, shape index: {}]   ;;  %s33_s1 = inlined_call_operand.vmem [shape: f32[1,128], index: 1, kind: output, shape index: {}]  }
   0x1   :  { %v10_v0 = vstv %s32_s0 }
   0x2   :  { %11 = vst [vmem:[%s33_s1] sm:$0x1] %v10_v0 }

</bundles_post_ra>
